<compile_context>
chip_gen: v5e
topology: v5e:2x2
jax: 0.10.0
libtpu: 0.0.40
codegen_flags: <defaults>
</compile_context>

<pallas_src>
import jax
import jax.numpy as jnp
import numpy as np
from jax.experimental import pallas as pl
from jax.experimental.pallas import tpu as pltpu


def _cfg_kernel(sigma_ref,     # SMEM (1,) f32            sigma
                z_ref,         # VMEM (C,   hw_tile) bf16  latent, channels-first
                cc_cond_ref,   # VMEM (Ccc, hw_tile) bf16  cond['c_concat']
                cc_unc_ref,    # VMEM (Ccc, hw_tile) bf16  uncond['c_concat']
                w1aT_ref,      # VMEM (C, C)   bf16        W1[:C].T  (z part)
                w1bcT_ref,     # VMEM (C, Ccc) bf16        image_cfg * W1[C:].T
                w1buT_ref,     # VMEM (C, Ccc) bf16        (1-image_cfg) * W1[C:].T
                bias_ref,      # VMEM (C, 1)   f32         text-CFG-combined bias
                out_ref):      # VMEM (C, hw_tile)         out dtype
    sigma = sigma_ref[0]
    c_scale = 1.0 / (sigma * sigma + 1.0)

    # Three tiny-K bf16 MXU matmuls with f32 accumulation.  The image-CFG
    # blend lives in the pre-scaled weights, so no VPU blend / casts on the
    # big tiles.
    h = jnp.dot(w1aT_ref[...], z_ref[...], preferred_element_type=jnp.float32)
    h = h + jnp.dot(w1bcT_ref[...], cc_cond_ref[...],
                    preferred_element_type=jnp.float32)
    h = h + jnp.dot(w1buT_ref[...], cc_unc_ref[...],
                    preferred_element_type=jnp.float32)

    # Grid-invariant bias (precomputed in the wrapper) + single scale, then
    # one lane-dense full-tile store.
    out_ref[...] = (c_scale * (h + bias_ref[...])).astype(out_ref.dtype)


def _pick_hw_tile(hw, col_bytes, *, cap=32768, vmem_budget=12 << 20, min_steps=2):
    """Pick the spatial (lane) tile width.

    Largest power-of-two multiple of 128 dividing HW such that
      (a) double-buffered per-step tile traffic fits `vmem_budget`
          (12 MiB keeps us under v5e's 16 MiB default scoped VMEM; v6e/v7x
          defaults have more headroom),
      (b) the grid keeps >= `min_steps` steps so ("parallel",) can shard the
          spatial axis across v7x's 2 TensorCores (unless HW is too small),
      (c) tile <= cap (32K cols ≈ 2.5 MB/step at C=Ccc=8 — big enough that the
          ~0.35 µs per-grid-step overhead is fully amortized).
    """
    tile = 128
    t = 128
    while t <= min(hw, cap):
        if hw % t == 0:
            steps = hw // t
            fits = 2 * t * col_bytes <= vmem_budget
            keeps_parallel = steps >= min_steps or hw < min_steps * 128
            if fits and keeps_parallel:
                tile = t
        t *= 2
    return tile


def cfg_denoiser_forward(z, sigma, cond, uncond,
                         text_cfg_scale, image_cfg_scale, params,
                         hw_tile=None, out_dtype=jnp.float32):
    """z: (1, C, H, W)  sigma: (1,)  cond/uncond dicts as in the PyTorch module."""
    _, C, H, W = z.shape
    HW = H * W
    assert HW % 128 == 0, "H*W must be a multiple of 128 for the lane-dense layout"

    # NCHW -> (C, HW): pure reshape (channels on sublanes, spatial on lanes),
    # big tensors travel to the kernel as bf16 (half the DMA bytes).
    def flat(x):
        return x[0].reshape(x.shape[1], HW).astype(jnp.bfloat16)

    z_f = flat(z)
    cc_cond = flat(cond['c_concat'][0])
    cc_unc = flat(uncond['c_concat'][0])
    Ccc = cc_cond.shape[0]

    # --- grid-invariant tiny precomputes (wrapper, f32) ---------------------
    # Text-CFG only touches the spatially-constant cross-attn bias -> one
    # (C, 1) vector instead of per-step token-mean + (C, D) reductions.
    ctx_cond = cond['c_crossattn'][0][0].astype(jnp.float32)     # (T, D)
    ctx_unc = uncond['c_crossattn'][0][0].astype(jnp.float32)    # (T, D)
    mean_c = jnp.mean(ctx_cond, axis=0)                          # (D,)
    mean_u = jnp.mean(ctx_unc, axis=0)                           # (D,)
    ctx_blend = mean_u + text_cfg_scale * (mean_c - mean_u)      # (D,)
    bias = (ctx_blend @ params['wc'].astype(jnp.float32)).reshape(C, 1)

    # Image-CFG only mixes the two c_concat branches -> fold the blend into
    # the tiny W1b weight (removes the per-tile blend/casts and the bf16
    # double rounding of v1).
    w1 = params['w1'].astype(jnp.float32)                        # (C+Ccc, C)
    w1aT = jnp.transpose(w1[:C]).astype(jnp.bfloat16)            # (C, C)
    w1bT = jnp.transpose(w1[C:])                                 # (C, Ccc) f32
    w1bcT = (image_cfg_scale * w1bT).astype(jnp.bfloat16)
    w1buT = ((1.0 - image_cfg_scale) * w1bT).astype(jnp.bfloat16)

    sigma_arr = jnp.asarray(sigma, dtype=jnp.float32).reshape(1)

    out_itemsize = np.dtype(out_dtype).itemsize
    col_bytes = (C + 2 * Ccc) * 2 + C * out_itemsize   # HBM bytes / spatial column
    if hw_tile is None:
        hw_tile = _pick_hw_tile(HW, col_bytes)
    assert HW % hw_tile == 0 and hw_tile % 128 == 0
    grid = (HW // hw_tile,)

    # Only raise the scoped-VMEM limit if the double-buffered tiles actually
    # need more than the most conservative (v5e) default.
    vmem_need = (2 * hw_tile * col_bytes
                 + (w1aT.size + w1bcT.size + w1buT.size) * 2 + bias.size * 4)
    vmem_limit = int(vmem_need * 1.25) if vmem_need > (12 << 20) else None

    out_flat = pl.pallas_call(
        _cfg_kernel,
        out_shape=jax.ShapeDtypeStruct((C, HW), out_dtype),
        grid=grid,
        in_specs=[
            pl.BlockSpec(memory_space=pltpu.SMEM),            # sigma
            pl.BlockSpec((C, hw_tile), lambda i: (0, i)),     # z
            pl.BlockSpec((Ccc, hw_tile), lambda i: (0, i)),   # cond c_concat
            pl.BlockSpec((Ccc, hw_tile), lambda i: (0, i)),   # uncond c_concat
            pl.BlockSpec((C, C), lambda i: (0, 0)),           # W1a^T     (resident)
            pl.BlockSpec((C, Ccc), lambda i: (0, 0)),         # i*W1b^T   (resident)
            pl.BlockSpec((C, Ccc), lambda i: (0, 0)),         # (1-i)*W1b^T (resident)
            pl.BlockSpec((C, 1), lambda i: (0, 0)),           # bias      (resident)
        ],
        out_specs=pl.BlockSpec((C, hw_tile), lambda i: (0, i)),
        compiler_params=pltpu.CompilerParams(
            dimension_semantics=("parallel",),                 # shards spatial axis
            vmem_limit_bytes=vmem_limit),
    )(sigma_arr, z_f, cc_cond, cc_unc, w1aT, w1bcT, w1buT, bias)

    # (C, HW) -> (1, C, H, W): pure reshape.
    return out_flat.reshape(1, C, H, W)


def _reference(z, sigma, cond, uncond, t_scale, i_scale, params):
    """Pure-JAX f32 reference mirroring the PyTorch forward semantics."""
    def inner(zz, sig, ctx, cc):
        _, C, H, W = zz.shape
        x = jnp.concatenate([zz, cc], axis=1)                    # (1, C+Ccc, H, W)
        x = jnp.transpose(x[0], (1, 2, 0)).reshape(H * W, -1)    # (HW, C+Ccc)
        h = x @ params['w1']
        b = jnp.mean(ctx[0], axis=0, keepdims=True) @ params['wc']
        o = (h + b) * (1.0 / (sig ** 2 + 1.0))
        return jnp.transpose(o.reshape(H, W, C), (2, 0, 1))[None, ...]

    s = sigma[0]
    out_cond = inner(z, s, cond['c_crossattn'][0], cond['c_concat'][0])
    out_img = inner(z, s, uncond['c_crossattn'][0], cond['c_concat'][0])
    out_unc = inner(z, s, uncond['c_crossattn'][0], uncond['c_concat'][0])
    return out_unc + t_scale * (out_cond - out_img) + i_scale * (out_img - out_unc)


if __name__ == "__main__":
    key = jax.random.PRNGKey(0)
    kz, kcc, kuc, kctx_c, kctx_u, kw1, kwc = jax.random.split(key, 7)

    C, H, W = 8, 16, 16     # latent channels / spatial  (HW = 256 -> grid=(2,))
    Ccc = 8                 # c_concat channels
    T, D = 8, 32            # text tokens / hidden

    z = jax.random.normal(kz, (1, C, H, W), dtype=jnp.float32)
    sigma = jnp.array([1.5], dtype=jnp.float32)
    cond = {
        'c_crossattn': [jax.random.normal(kctx_c, (1, T, D), dtype=jnp.float32)],
        'c_concat': [jax.random.normal(kcc, (1, Ccc, H, W), dtype=jnp.float32)],
    }
    uncond = {
        'c_crossattn': [jax.random.normal(kctx_u, (1, T, D), dtype=jnp.float32)],
        'c_concat': [jax.random.normal(kuc, (1, Ccc, H, W), dtype=jnp.float32)],
    }
    params = {
        'w1': jax.random.normal(kw1, (C + Ccc, C), dtype=jnp.float32) * 0.1,
        'wc': jax.random.normal(kwc, (D, C), dtype=jnp.float32) * 0.1,
    }

    text_cfg_scale = 7.5
    image_cfg_scale = 1.5

    ref = _reference(z, sigma, cond, uncond,
                     text_cfg_scale, image_cfg_scale, params)

    # Default f32-output path (auto-picked tile: 128 -> grid=(2,), exercising
    # the multi-block / megacore-shardable path even at this toy size).
    out = cfg_denoiser_forward(z, sigma, cond, uncond,
                               text_cfg_scale, image_cfg_scale, params)
    out = jax.block_until_ready(out)
    np.testing.assert_allclose(np.asarray(out), np.asarray(ref),
                               rtol=5e-2, atol=5e-2)

    # Optional bf16-output path (halves output HBM traffic); f32 accumulation
    # inside the kernel, only the final store is bf16.
    out_bf16 = cfg_denoiser_forward(z, sigma, cond, uncond,
                                    text_cfg_scale, image_cfg_scale, params,
                                    out_dtype=jnp.bfloat16)
    out_bf16 = jax.block_until_ready(out_bf16)
    np.testing.assert_allclose(np.asarray(out_bf16.astype(jnp.float32)),
                               np.asarray(ref), rtol=7e-2, atol=7e-2)

    print("KERNEL_OK")
</pallas_src>

<mosaic_0001>
module attributes {stable_mosaic.version = 11 : i64} {
  func.func @_cfg_kernel(%arg0: i32, %arg1: memref<1xf32, #tpu.memory_space<smem>>, %arg2: memref<8x128xbf16, #tpu.memory_space<vmem>>, %arg3: memref<8x128xbf16, #tpu.memory_space<vmem>>, %arg4: memref<8x128xbf16, #tpu.memory_space<vmem>>, %arg5: memref<8x8xbf16, #tpu.memory_space<vmem>>, %arg6: memref<8x8xbf16, #tpu.memory_space<vmem>>, %arg7: memref<8x8xbf16, #tpu.memory_space<vmem>>, %arg8: memref<8x1xf32, #tpu.memory_space<vmem>>, %arg9: memref<8x128xf32, #tpu.memory_space<vmem>>) attributes {dimension_semantics = [#tpu.dimension_semantics<parallel>], iteration_bounds = array<i64: 2>, scalar_prefetch = 0 : i64, scratch_operands = 0 : i64, tpu.core_type = #tpu.core_type<tc>, window_params = [{transform_indices = @transform_0, window_bounds = array<i64: 1>}, {transform_indices = @transform_1, window_bounds = array<i64: 8, 128>}, {transform_indices = @transform_2, window_bounds = array<i64: 8, 128>}, {transform_indices = @transform_3, window_bounds = array<i64: 8, 128>}, {pipeline_mode = #tpu.pipeline_mode<synchronous>, transform_indices = @transform_4, window_bounds = array<i64: 8, 8>}, {pipeline_mode = #tpu.pipeline_mode<synchronous>, transform_indices = @transform_5, window_bounds = array<i64: 8, 8>}, {pipeline_mode = #tpu.pipeline_mode<synchronous>, transform_indices = @transform_6, window_bounds = array<i64: 8, 8>}, {pipeline_mode = #tpu.pipeline_mode<synchronous>, transform_indices = @transform_7, window_bounds = array<i64: 8, 1>}, {transform_indices = @transform_8, window_bounds = array<i64: 8, 128>}]} {
    %c0 = arith.constant 0 : index
    %0 = memref.load %arg1[%c0] : memref<1xf32, #tpu.memory_space<smem>>
    %1 = arith.mulf %0, %0 : f32
    %cst = arith.constant 1.000000e+00 : f32
    %2 = arith.addf %1, %cst : f32
    %cst_0 = arith.constant 1.000000e+00 : f32
    %3 = arith.divf %cst_0, %2 : f32
    %c0_1 = arith.constant 0 : index
    %c0_2 = arith.constant 0 : index
    %4 = vector.load %arg5[%c0_1, %c0_2] : memref<8x8xbf16, #tpu.memory_space<vmem>>, vector<8x8xbf16>
    %c0_3 = arith.constant 0 : index
    %c0_4 = arith.constant 0 : index
    %5 = vector.load %arg2[%c0_3, %c0_4] : memref<8x128xbf16, #tpu.memory_space<vmem>>, vector<8x128xbf16>
    %cst_5 = arith.constant dense<0.000000e+00> : vector<8x128xf32>
    %6 = tpu.matmul %4, %5, %cst_5 {dimension_numbers = #tpu.dot_dimension_numbers<[1], [0], [0], [1], [0, 0, 1, 1], [], []>} : vector<8x8xbf16>, vector<8x128xbf16>, vector<8x128xf32> -> vector<8x128xf32>
    %c0_6 = arith.constant 0 : index
    %c0_7 = arith.constant 0 : index
    %7 = vector.load %arg6[%c0_6, %c0_7] : memref<8x8xbf16, #tpu.memory_space<vmem>>, vector<8x8xbf16>
    %c0_8 = arith.constant 0 : index
    %c0_9 = arith.constant 0 : index
    %8 = vector.load %arg3[%c0_8, %c0_9] : memref<8x128xbf16, #tpu.memory_space<vmem>>, vector<8x128xbf16>
    %cst_10 = arith.constant dense<0.000000e+00> : vector<8x128xf32>
    %9 = tpu.matmul %7, %8, %cst_10 {dimension_numbers = #tpu.dot_dimension_numbers<[1], [0], [0], [1], [0, 0, 1, 1], [], []>} : vector<8x8xbf16>, vector<8x128xbf16>, vector<8x128xf32> -> vector<8x128xf32>
    %10 = arith.addf %6, %9 : vector<8x128xf32>
    %c0_11 = arith.constant 0 : index
    %c0_12 = arith.constant 0 : index
    %11 = vector.load %arg7[%c0_11, %c0_12] : memref<8x8xbf16, #tpu.memory_space<vmem>>, vector<8x8xbf16>
    %c0_13 = arith.constant 0 : index
    %c0_14 = arith.constant 0 : index
    %12 = vector.load %arg4[%c0_13, %c0_14] : memref<8x128xbf16, #tpu.memory_space<vmem>>, vector<8x128xbf16>
    %cst_15 = arith.constant dense<0.000000e+00> : vector<8x128xf32>
    %13 = tpu.matmul %11, %12, %cst_15 {dimension_numbers = #tpu.dot_dimension_numbers<[1], [0], [0], [1], [0, 0, 1, 1], [], []>} : vector<8x8xbf16>, vector<8x128xbf16>, vector<8x128xf32> -> vector<8x128xf32>
    %14 = arith.addf %10, %13 : vector<8x128xf32>
    %c0_16 = arith.constant 0 : index
    %c0_17 = arith.constant 0 : index
    %15 = vector.load %arg8[%c0_16, %c0_17] : memref<8x1xf32, #tpu.memory_space<vmem>>, vector<8x1xf32>
    %16 = vector.broadcast %15 : vector<8x1xf32> to vector<8x128xf32>
    %17 = arith.addf %14, %16 : vector<8x128xf32>
    %18 = vector.broadcast %3 : f32 to vector<8x128xf32>
    %19 = arith.mulf %18, %17 : vector<8x128xf32>
    %c0_18 = arith.constant 0 : index
    %c0_19 = arith.constant 0 : index
    %20 = vector.load %arg9[%c0_18, %c0_19] : memref<8x128xf32, #tpu.memory_space<vmem>>, vector<8x128xf32>
    tpu.vector_store %arg9[%c0_18, %c0_19], %19 {strides = array<i32>} : memref<8x128xf32, #tpu.memory_space<vmem>>, vector<8x128xf32>,
    return
  }
  func.func @transform_0(%arg0: i32) -> i32 {
    %c0_i32 = arith.constant 0 : i32
    %c0_i32_0 = arith.constant 0 : i32
    return %c0_i32 : i32
  }
  func.func @transform_1(%arg0: i32) -> (i32, i32) {
    %c0_i32 = arith.constant 0 : i32
    %c0_i32_0 = arith.constant 0 : i32
    return %c0_i32, %arg0 : i32, i32
  }
  func.func @transform_2(%arg0: i32) -> (i32, i32) {
    %c0_i32 = arith.constant 0 : i32
    %c0_i32_0 = arith.constant 0 : i32
    return %c0_i32, %arg0 : i32, i32
  }
  func.func @transform_3(%arg0: i32) -> (i32, i32) {
    %c0_i32 = arith.constant 0 : i32
    %c0_i32_0 = arith.constant 0 : i32
    return %c0_i32, %arg0 : i32, i32
  }
  func.func @transform_4(%arg0: i32) -> (i32, i32) {
    %c0_i32 = arith.constant 0 : i32
    %c0_i32_0 = arith.constant 0 : i32
    %c0_i32_1 = arith.constant 0 : i32
    return %c0_i32, %c0_i32_0 : i32, i32
  }
  func.func @transform_5(%arg0: i32) -> (i32, i32) {
    %c0_i32 = arith.constant 0 : i32
    %c0_i32_0 = arith.constant 0 : i32
    %c0_i32_1 = arith.constant 0 : i32
    return %c0_i32, %c0_i32_0 : i32, i32
  }
  func.func @transform_6(%arg0: i32) -> (i32, i32) {
    %c0_i32 = arith.constant 0 : i32
    %c0_i32_0 = arith.constant 0 : i32
    %c0_i32_1 = arith.constant 0 : i32
    return %c0_i32, %c0_i32_0 : i32, i32
  }
  func.func @transform_7(%arg0: i32) -> (i32, i32) {
    %c0_i32 = arith.constant 0 : i32
    %c0_i32_0 = arith.constant 0 : i32
    %c0_i32_1 = arith.constant 0 : i32
    return %c0_i32, %c0_i32_0 : i32, i32
  }
  func.func @transform_8(%arg0: i32) -> (i32, i32) {
    %c0_i32 = arith.constant 0 : i32
    %c0_i32_0 = arith.constant 0 : i32
    return %c0_i32, %arg0 : i32, i32
  }
}

</mosaic_0001>

<bundles_post_ra>
// kernel: tpu_custom_call.1
= control target key start
LH: loop header
LB: loop body
LE: loop exit
PB: predicated region body
PF: predicated region fallthrough
CT: control target
= control target key end

     0   :  { %s1181_s0 = inlined_call_operand.<no memory space> [shape: f32[1], index: 0, kind: input, shape index: {}]   ;;  %s1182_s1 = inlined_call_operand.vmem [shape: bf16[8,256], index: 1, kind: input, shape index: {}]   ;;  %s1183_s2 = inlined_call_operand.hbm [shape: bf16[8,256], index: 2, kind: input, shape index: {}]   ;;  %s1184_s3 = inlined_call_operand.hbm [shape: bf16[8,256], index: 3, kind: input, shape index: {}]   ;;  %s1185_s4 = inlined_call_operand.hbm [shape: bf16[8,8], index: 4, kind: input, shape index: {}]   ;;  %s1186_s5 = inlined_call_operand.vmem [shape: bf16[8,8], index: 5, kind: input, shape index: {}]   ;;  %s1187_s6 = inlined_call_operand.hbm [shape: bf16[8,8], index: 6, kind: input, shape index: {}]   ;;  %s1188_s7 = inlined_call_operand.vmem [shape: f32[8,1], index: 7, kind: input, shape index: {}]   ;;  %s1189_s8 = inlined_call_operand.hbm [shape: f32[8,256], index: 8, kind: output, shape index: {}]  }
   0x1   :  { %1194 = sst [smem:[#allocation21_spill]] %s1185_s4 }
   0x2   :  { %1195 = sst [smem:[#allocation22_spill]] %s1187_s6 }
   0x3   :  { %13 = sst [smem:[#allocation2]] %s1181_s0 }
   0x4   :  { %14 = vsyncpa [#allocation4], 0 }
   0x5   :  { %16 = vsyncpa [#allocation4 + $0x1], 0 }
   0x6   :  { %17 = vsyncpa [#allocation7], 0 }
   0x7   :  { %19 = vsyncpa [#allocation7 + $0x1], 0 }
   0x8   :  { %20 = vsyncpa [#allocation10], 0 }
   0x9   :  { %21 = vsyncpa [#allocation5], 0 }
   0xa   :  { %23 = vsyncpa [#allocation5 + $0x1], 0  ;;  %s997_s29 = smov 0   ;;  %s999_s30 = smov 0  }
   0xb   :  { %s1001_s9 = smov 0   ;;  %s1003_s10 = smov 0  }
   0xc LB: > { %1196 = sst [smem:[#allocation17_spill]] %s940_s9  ;;  %s1018_s0 = sadd.s32 4294967295, %s944_s10   ;;  %s944_s10 = sphi %s1003_s10, %s1209_s10   ;;  %s940_s9 = sphi %s1001_s9, %s1211_s9   ;;  %s936_s30 = sphi %s999_s30, %s1213_s30   ;;  %s932_s29 = sphi %s997_s29, %s1212_s29  }
   0xd   : > { %1197 = sst [smem:[#allocation18_spill]] %s944_s10  ;;  %s645_s11 = sadd.s32 4294967294, %s944_s10  }
   0xe   : > { %p96_p0 = scmp.ne.s32.totalorder %s936_s30, %s932_s29  ;;  %p97_p1 = scmp.eq.s32.totalorder %s1018_s0, 0 }
   0xf   : > { %p230_p2 = scmp.eq.s32.totalorder %s1018_s0, 1  ;;  %p236_p3 = scmp.eq.s32.totalorder %s645_s11, 1 }
  0x10   : > { %p1027_p4 = por %p97_p1, %p96_p0  ;;  %p646_p5 = scmp.ge.s32.totalorder %s944_s10, 1 }
  0x11   : > { %p1032_p6 = por %p236_p3, %p96_p0  ;;  %p243_p7 = scmp.lt.s32.totalorder %s944_s10, 3 }
  0x12   : > { %s1200_s4 = sld [smem:[#allocation21_spill]]  ;;  %s946_s18 = smov [#allocation8]  }
  0x13   : > { %p1040_p8 = pnand %p646_p5, %p243_p7  ;;  %s260_s19 = sshll.u32 %s946_s18, 4  ;;  %s261_s19 = int_to_ptr.vmem [resolvable:$true] %s260_s19 }
  0x14   : > { %s1202_s6 = sld [smem:[#allocation22_spill]]  ;;  %s947_s23 = smov [#allocation9]  }
  0x15   : > { %p684_p10 = pneg %p1040_p8  ;;  %s275_s24 = sshll.u32 %s947_s23, 4  ;;  %s276_s24 = int_to_ptr.vmem [resolvable:$true] %s275_s24 }
  0x16   : > { %s1053_s25 = sadd.s32 1, %s944_s10   ;;  %s83_s26 = sadd.s32 1, %s940_s9 }
  0x17   : > { %p685_p11 = pnand %p684_p10, %p97_p1  ;;  %1203 = sst [smem:[#allocation19_spill]] %s1053_s25 }
  0x18   : > { %s258_s16 = sshll.u32 %s1200_s4, 4  ;;  %s80_s27 = ssub.s32 %s944_s10, %s1053_s25  ;;  %s259_s16 = int_to_ptr.hbm [resolvable:$true] %s258_s16 }
  0x19   : > { %687 = dma.hbm_to_vmem [thread:$0]  (!%p685_p11), %s259_s16, 64, %s261_s19, [#allocation7]  }
  0x1a   : > { %s273_s22 = sshll.u32 %s1202_s6, 4  ;;  %p90_p12 = scmp.ne.s32.totalorder %s940_s9, %s936_s30  ;;  %s274_s22 = int_to_ptr.hbm [resolvable:$true] %s273_s22 }
  0x1b   : > { %690 = dma.hbm_to_vmem [thread:$0]  (!%p685_p11), %s274_s22, 64, %s276_s24, [#allocation10]  }
  0x1c   : > { %p81_p13 = scmp.eq.s32.totalorder %s80_s27, 0  ;;  %p91_p0 = scmp.eq.s32.totalorder %s944_s10, 0 }
  0x1d   : > { %p1063_p3 = por %p230_p2, %p90_p12  ;;  %p704_p5 = scmp.lt.s32.totalorder %s944_s10, 2 }
  0x1e   : > { %s1069_s11 = scalar_select %p81_p13, %s940_s9, %s83_s26  }
  0x1f   : > { %p92_p7 = por %p91_p0, %p90_p12  ;;  %s296_s14 = sand.u32 1, %s940_s9  }
  0x20   : > { %1205 = sst [smem:[#allocation20_spill]] %s1069_s11  ;;  %s1072_s15 = sshll.u32 %s296_s14, 2 }
  0x21   : > { %s651_s16 = sshll.u32 %s944_s10, 2  ;;  %s300_s21 = scalar_lea.vmem [#allocation3], %s1072_s15 }
  0x22   : > { %s304_s20 = scalar_lea.hbm %s1183_s2, %s651_s16  ;;  %s308_s22 = sshll.u32 %s300_s21, 4  ;;  %s309_s22 = int_to_ptr.vmem [resolvable:$true] %s308_s22 }
  0x23   : > { %s306_s23 = sshll.u32 %s304_s20, 4  ;;  %p1079_p2 = pnand %p704_p5, %p92_p7  ;;  %s307_s23 = int_to_ptr.hbm [resolvable:$true] %s306_s23 }
  0x24   : > { %s323_s4 = scalar_lea.hbm %s1184_s3, %s651_s16  ;;  %s315_s6 = sand.u32 1, %s944_s10  }
  0x25   : > { %s297_s11 = scalar_lea.sflag [#allocation4], %s296_s14  ;;  %s806_s9 = sshra.s32 %s307_s23, 4  ;;  %s807_s9 = int_to_ptr.hbm [resolvable:$true] %s806_s9 }
  0x26   : > { %s808_s18 = scalar_lea.hbm %s807_s9, 4  ;;  %p810_p11 = pneg %p1079_p2 }
  0x27   : > { %p809_p10 = scmp.ne.s32.totalorder %s807_s9, %s808_s18  ;;  %s813_s21 = scalar_lea.hbm %s1183_s2, 8 }
  0x28   : > { %p814_p0 = scmp.lt.s32.totalorder %s807_s9, %s1183_s2  ;;  %p815_p5 = scmp.lt.s32.totalorder %s813_s21, %s808_s18 }
  0x29   : > { %p811_p12 = pnand %p810_p11, %p809_p10 }
  0x2a   : > { %p816_p7 = por %p815_p5, %p814_p0 }
  0x2b   : > { %p812_p13 = pneg %p811_p12 }
  0x2d   : > { %p817_p9 = pnand %p816_p7, %p812_p13 }
  0x2f   : > { %820 = shalt.err (!%p817_p9)
}
  0x30   : > { %694 = dma.hbm_to_vmem [thread:$0]  (!%p1079_p2), %s307_s23, 64, %s309_s22, %s297_s11  }
  0x31   : > { %s325_s14 = sshll.u32 %s323_s4, 4  ;;  %s319_s16 = scalar_lea.vmem [#allocation6], %s1072_s15  ;;  %s326_s14 = int_to_ptr.hbm [resolvable:$true] %s325_s14 }
  0x32   : > { %s327_s25 = sshll.u32 %s319_s16, 4  ;;  %s316_s19 = scalar_lea.sflag [#allocation7], %s315_s6  ;;  %s328_s25 = int_to_ptr.vmem [resolvable:$true] %s327_s25 }
  0x33   : > { %s836_s20 = sshra.s32 %s326_s14, 4  ;;  %s843_s21 = scalar_lea.hbm %s1184_s3, 8  ;;  %s837_s20 = int_to_ptr.hbm [resolvable:$true] %s836_s20 }
  0x34   : > { %s838_s10 = scalar_lea.hbm %s837_s20, 4  ;;  %p844_p9 = scmp.lt.s32.totalorder %s837_s20, %s1184_s3 }
  0x35   : > { %p839_p10 = scmp.ne.s32.totalorder %s837_s20, %s838_s10  ;;  %p845_p0 = scmp.lt.s32.totalorder %s843_s21, %s838_s10 }
  0x37   : > { %p841_p12 = pnand %p839_p10, %p810_p11  ;;  %p846_p5 = por %p845_p0, %p844_p9 }
  0x39   : > { %p842_p13 = pneg %p841_p12 }
  0x3b   : > { %p847_p7 = pnand %p846_p5, %p842_p13 }
  0x3d   : > { %850 = shalt.err (!%p847_p7)
}
  0x3e   : > { %697 = dma.hbm_to_vmem [thread:$0]  (!%p1079_p2), %s326_s14, 64, %s328_s25, %s316_s19  }
  0x3f   : > { %336 = sbr.rel (%p1040_p8) target bundleno = 224 (0xe0), region = 52  ;;  %s1115_s4 = sand.u32 (!%p1040_p8), 1, %s936_s30  }
  0x40   : > { %s655_s6 = sshll.u32 (!%p1040_p8), %s1115_s4, 2  ;;  %s339_s15 = scalar_lea.sflag (!%p1040_p8), [#allocation4], %s1115_s4 }
  0x41   : > { %s342_s22 = scalar_lea.vmem (!%p1040_p8), [#allocation3], %s655_s6 }
  0x44   : > { %911 = dma.done.wait (%p1027_p4), %s339_s15, 64  }
  0x45   : > { %913 = vsyncadd (%p1027_p4), %s339_s15, 4294967232  ;;  %s348_s10 = sand.u32 1, %s1018_s0   ;;  %s352_s17 = scalar_lea.vmem [#allocation6], %s655_s6 }
  0x46   : > { %s349_s25 = scalar_lea.sflag [#allocation7], %s348_s10 }
  0x47   : > { %915 = dma.done.wait (%p1027_p4), %s349_s25, 64  }
  0x48   : > { %917 = vsyncadd (%p1027_p4), %s349_s25, 4294967232 }
  0x49   : > { %919 = dma.done.wait (%p97_p1), [#allocation7], 64  }
  0x4a   : > { %921 = vsyncadd (%p97_p1), [#allocation7], 4294967232 }
  0x4b   : > { %923 = dma.done.wait (%p97_p1), [#allocation10], 64  }
  0x4c   : > { %925 = vsyncadd (%p97_p1), [#allocation10], 4294967232  ;;  %p405_p8 = scmp.lt.s32.totalorder %s1018_s0, 1  ;;  %v948_v0 = vmov 0   ;;  %s410_s23 = sld [smem:[#allocation2]]  ;;  %vm437_vm0 = vcmask 1043456  }
  0x4d   : > { %743 = vset.pattern.permute.xlu0 %v948_v0  ;;  %v432_v1 = vld [vmem:[%s342_s22] sm:$0xf]  ;;  %v474_v3 = vld [vmem:[%s352_s17] sm:$0xf]  ;;  %vm433_vm1 = vcmask 64512   ;;  %s659_s11 = sshll.u32 %s1115_s4, 3 }
  0x4e   : > { %s406_s12 = scalar_select %p405_p8, %s1018_s0, 1  ;;  %v439_v4 = vsel %vm437_vm0, %v432_v1, 0  ;;  %v479_v6 = vsel %vm437_vm0, %v474_v3, 0  ;;  %v495_v7 = vld [vmem:[%s1188_s7] sm:$0xff]  ;;  %v429_v9 = vld [vmem:[#allocation8] sm:$0xf] }
  0x4f   : > { %448 = vmatpush.bf16.msra.mxu0 %v439_v4  ;;  %v431_v8 = vld [vmem:[%s1186_s5] sm:$0xf]  ;;  %488 = vmatpush.bf16.msra.mxu2 %v479_v6  ;;  %v473_v10 = vld [vmem:[#allocation9] sm:$0xf]  ;;  %s665_s6 = sshll.u32 %s1018_s0, 3  ;;  %s404_s17 = scalar_lea.vmem [#allocation11], %s659_s11 }
  0x50   : > { %s660_s24 = sshll.u32 %s406_s12, 2  ;;  %498 = vperm.xlu0 %743, %v495_v7   ;;  %s516_s25 = scalar_lea.hbm %s1189_s8, %s665_s6 }
  0x51   : > { %s408_s16 = scalar_lea.vmem %s1182_s1, %s660_s24  ;;  %s520_s12 = sshll.u32 %s516_s25, 4  ;;  %s521_s12 = int_to_ptr.hbm [resolvable:$true] %s520_s12 }
  0x52   : > { %v430_v2 = vld [vmem:[%s408_s16] sm:$0xf]  ;;  %s411_s19 = smul.f32 %s410_s23, %s410_s23  ;;  %661 = vmatmul.msk.bf16.vlgmr.msra.gmra.mxu0 %vm433_vm1, %v431_v8  ;;  %663 = vmatmul.msk.bf16.vlgmr.msra.gmra.mxu2 %vm433_vm1, %v473_v10  ;;  %s518_s23 = sshll.u32 %s404_s17, 4  ;;  %s519_s23 = int_to_ptr.vmem [resolvable:$true] %s518_s23 }
  0x53   : > { %v458_v5 = vsel %vm437_vm0, %v430_v2, 0  ;;  %s506_s0 = scalar_lea.sflag [#allocation5], %s1115_s4  ;;  %s880_s24 = sshra.s32 %s521_s12, 4  ;;  %s881_s24 = int_to_ptr.hbm [resolvable:$true] %s880_s24 }
  0x54   : > { %467 = vmatpush.bf16.msra.mxu1 %v458_v5  ;;  %s412_s26 = sadd.f32 1.0, %s411_s19  ;;  %s882_s27 = scalar_lea.hbm %s881_s24, 8 }
  0x55   : > { %p883_p1 = scmp.ne.s32.totalorder %s881_s24, %s882_s27  ;;  %s886_s19 = scalar_lea.hbm %s1189_s8, 16 }
  0x56   : > { %v413_v11 = vstv %s412_s26  ;;  %p887_p11 = scmp.lt.s32.totalorder %s881_s24, %s1189_s8  ;;  %p888_p10 = scmp.lt.s32.totalorder %s886_s19, %s882_s27 }
  0x57   : > { %662 = vmatmul.msk.bf16.vlgmr.msra.gmra.mxu1 %vm433_vm1, %v429_v9  ;;  %744 = vrcp.f32 %v413_v11  ;;  %v425_v14 = vand.u32 2147483648, %v413_v11  ;;  %vm419_vm2 = vweird.f32 %v413_v11  ;;  %v423_v16 = vand.u32 2147483647, %v413_v11  ;;  %p884_p4 = pnand %p883_p1, %p1063_p3 }
  0x58   : > { %p889_p12 = por %p888_p10, %p887_p11 }
  0x59   : > { %v426_v18 = vor.u32 1.1754944e-38, %v425_v14  ;;  %vm424_vm5 = vcmp.eq.f32.partialorder %v423_v16, 8.507059e+37  ;;  %p885_p2 = pneg %p884_p4 }
  0x5b   : > { %p890_p13 = pnand %p889_p12, %p885_p2 }
  0x5d   : > { %v745_v12 = vpop.eup %744 }
  0x5e   : > { %v415_v13 = vmul.f32 %v745_v12, %v413_v11  ;;  %vm420_vm3 = vweird.f32 %v745_v12 }
  0x5f   : > { %vm421_vm4 = vmor %vm419_vm2, %vm420_vm3 }
  0x60   : > { %v416_v15 = vsub.f32 1.0, %v415_v13 }
  0x62   : > { %v417_v17 = vmul.f32 %v745_v12, %v416_v15 }
  0x64   : > { %v418_v19 = vadd.f32 %v745_v12, %v417_v17 }
  0x66   : > { %v422_v20 = vsel %vm421_vm4, %v745_v12, %v418_v19 }
  0x67   : > { %v427_v21 = vsel %vm424_vm5, %v426_v18, %v422_v20 }
  0x68   : > { %668 = vpush %v427_v21 }
  0x99   : > { %s669_s15 = spop %668 }
  0x9a   : > { %v502_v30 = vstv %s669_s15 }
  0xc2   : > { %v499_v26 = vpop.permute.xlu0 %498 }
  0xcf   : > { %v450_v22 = vpop.f32.mrf.mxu0 }
  0xd4   : > { %v469_v23 = vpop.f32.mrf.mxu1 }
  0xd5   : > { %v470_v24 = vadd.f32 %v469_v23, %v450_v22  ;;  %v490_v25 = vpop.f32.mrf.mxu2 }
  0xd7   : > { %v494_v27 = vadd.f32 %v490_v25, %v470_v24  ;;  %v452_v28 = vpop.f32.mrf.mxu0 }
  0xd9   : > { %v501_v31 = vadd.f32 %v499_v26, %v494_v27 }
  0xdb   : > { %v503_v32 = vmul.f32 %v502_v30, %v501_v31 }
  0xdc   : > { %v471_v29 = vpop.f32.mrf.mxu1 }
  0xdd   : > { %504 = vst [vmem:[%s404_s17] sm:$0xff] %v503_v32  ;;  %v492_v33 = vpop.f32.mrf.mxu2 }
  0xde   : > { %893 = shalt.err (!%p890_p13)
}
  0xdf   : > { %682 = dma.vmem_to_hbm [thread:$0]  (%p1063_p3), %s519_s23, 128, %s521_s12, %s506_s0  }
  0xe0 PF: > { %s1207_s4 = sld [smem:[#allocation18_spill]]  ;;  %s532_s18 = sand.u32 1, %s932_s29  }
  0xe1   : > { %s533_s21 = scalar_lea.sflag [#allocation5], %s532_s18 }
  0xe6   : > { %p1208_p9 = scmp.ge.s32.totalorder %s1207_s4, 2 }
  0xe8   : > { %p699_p0 = pnand %p1208_p9, %p1032_p6 }
  0xea   : > { %p700_p5 = pneg %p699_p0 }
  0xec   : > { %927 = dma.done.wait (%p700_p5), %s533_s21, 128  }
  0xed   : > { %929 = vsyncadd (%p700_p5), %s533_s21, 4294967168  ;;  %s1209_s10 = sld [smem:[#allocation19_spill]]  ;;  %s1212_s29 = smov %s936_s30 }
  0xee   : > { %s1210_s26 = sld [smem:[#allocation17_spill]] }
  0xef   : > { %s1211_s9 = sld [smem:[#allocation20_spill]] }
  0xf3   : > { %p26_p7 = scmp.ge.s32.totalorder %s1209_s10, 4  }
  0xf4   : > { %s1213_s30 = smov %s1210_s26 }
  0xf5   :  { %28 = sbr.rel (!%p26_p7) target bundleno = 12 (0xc), region = 121 }
  0xfa   :  { %539 = vsyncpa [#allocation4], 1 }
  0xfb   :  { %541 = vsyncpa [#allocation4 + $0x1], 1 }
  0xfc   :  { %542 = vsyncpa [#allocation7], 1 }
  0xfd   :  { %544 = vsyncpa [#allocation7 + $0x1], 1 }
  0xfe   :  { %545 = vsyncpa [#allocation10], 1 }
  0xff   :  { %546 = vsyncpa [#allocation5], 1 }
 0x100   :  { %548 = vsyncpa [#allocation5 + $0x1], 1 }

</bundles_post_ra>
